<compile_context>
chip_gen: v6e
topology: v6e:2x2x1
jax: 0.10.0
libtpu: 0.0.40
codegen_flags: <defaults>
</compile_context>

<pallas_src>
import math

import jax
import jax.numpy as jnp
from jax.experimental import pallas as pl
from jax.experimental.pallas import tpu as pltpu

FREQ_DIM = 256          # frequency_embedding_size
HALF = FREQ_DIM // 2
HIDDEN = 32             # hidden_size (small, per instructions)
HIDDEN_PAD = 128        # lane-dense padded output width
MAX_PERIOD = 10000.0

# Cody-Waite split of pi/2. _PIO2_HI = 12867/8192 has 14 significant bits, so
# n * _PIO2_HI is exact in f32 for quadrant index n < 1024 (|args| < ~1608).
_TWO_OVER_PI = 0.6366197723675814
_PIO2_HI = 1.5706787109375
_PIO2_LO = 1.1761585739661921e-04   # pi/2 - _PIO2_HI


def _round_up(x, m):
    return ((x + m - 1) // m) * m


def _sincos(x):
    """Fused sin/cos sharing one Cody-Waite range reduction (f32 in/out)."""
    n = jnp.floor(x * _TWO_OVER_PI + 0.5)          # nearest quadrant index
    r = x - n * _PIO2_HI
    r = r - n * _PIO2_LO                           # r in ~[-pi/4, pi/4]
    r2 = r * r
    # Short Horner polynomials on [-pi/4, pi/4]; error << bf16 quantization.
    s = r * (1.0 + r2 * (-1.0 / 6.0 + r2 * (1.0 / 120.0 + r2 * (-1.0 / 5040.0))))
    c = 1.0 + r2 * (-0.5 + r2 * (1.0 / 24.0 + r2 * (-1.0 / 720.0)))
    # Quadrant selection (works for negative n via two's-complement &).
    q = n.astype(jnp.int32)
    swap = (q & 1) != 0
    sin_base = jnp.where(swap, c, s)
    cos_base = jnp.where(swap, s, c)
    sin_x = jnp.where((q & 2) != 0, -sin_base, sin_base)
    cos_x = jnp.where(((q + 1) & 2) != 0, -cos_base, cos_base)
    return sin_x, cos_x


def timestep_embedder_kernel(t_ref, freqs_ref, w1c_ref, w1s_ref, b1_ref,
                             w2_ref, b2_ref, o_ref):
    # t tile: (TN, 1) f32 ; freqs: (1, HALF) f32 (precomputed in the wrapper).
    args = t_ref[...] * freqs_ref[...]                     # (TN, HALF), f32
    sin_a, cos_a = _sincos(args)
    cos_b = cos_a.astype(jnp.bfloat16)                     # values in [-1, 1]
    sin_b = sin_a.astype(jnp.bfloat16)

    # First Linear, split so the (TN, 256) concat is never materialized:
    #   emb @ W1 == cos(args) @ W1[:HALF] + sin(args) @ W1[HALF:]
    h = (jnp.dot(cos_b, w1c_ref[...], preferred_element_type=jnp.float32)
         + jnp.dot(sin_b, w1s_ref[...], preferred_element_type=jnp.float32)
         + b1_ref[...])                                    # (TN, HIDDEN) f32
    h = h * jax.nn.sigmoid(h)                              # SiLU in f32

    # Second Linear against the lane-padded (HIDDEN, HIDDEN_PAD) weights so the
    # output store is full-lane; columns [HIDDEN:] are exact zeros.
    out = jnp.dot(h.astype(jnp.bfloat16), w2_ref[...],
                  preferred_element_type=jnp.float32) + b2_ref[...]
    o_ref[...] = out.astype(o_ref.dtype)


def timestep_embedder(t, w1, b1, w2, b2, *, tile_n=2048, out_dtype=jnp.float32):
    """t: (N,) float -> (N, HIDDEN). w1:(256,H), w2:(H,H) in (in,out) layout."""
    n = t.shape[0]

    # Batch tile: defensively a multiple of 8 sublanes; pad N up to a multiple.
    tile_n = max(8, _round_up(int(tile_n), 8))
    tn = min(tile_n, _round_up(n, 8))
    n_pad = _round_up(n, tn)
    grid = (n_pad // tn,)

    t2d = jnp.zeros((n_pad, 1), jnp.float32).at[:n, 0].set(t.astype(jnp.float32))

    # Constant frequency table, computed once outside the kernel.
    freqs = jnp.exp(
        -math.log(MAX_PERIOD) * jnp.arange(HALF, dtype=jnp.float32) / HALF
    ).reshape(1, HALF)

    # bf16 weights for the MXU; biases stay f32 (added to f32 accumulators).
    w1_bf = w1.astype(jnp.bfloat16)
    w1_cos = w1_bf[:HALF]                                  # (HALF, HIDDEN)
    w1_sin = w1_bf[HALF:]                                  # (HALF, HIDDEN)
    b1_2d = b1.astype(jnp.float32).reshape(1, HIDDEN)

    # Lane-dense output path: zero-pad W2 / b2 to 128 output lanes.
    w2_pad = jnp.zeros((HIDDEN, HIDDEN_PAD), jnp.bfloat16)
    w2_pad = w2_pad.at[:, :HIDDEN].set(w2.astype(jnp.bfloat16))
    b2_pad = jnp.zeros((1, HIDDEN_PAD), jnp.float32)
    b2_pad = b2_pad.at[0, :HIDDEN].set(b2.astype(jnp.float32))

    # Weights/biases/freqs: constant index_map -> resident in VMEM across steps.
    const = lambda shape: pl.BlockSpec(shape, lambda i: (0, 0))

    out = pl.pallas_call(
        timestep_embedder_kernel,
        out_shape=jax.ShapeDtypeStruct((n_pad, HIDDEN_PAD), out_dtype),
        grid=grid,
        in_specs=[
            pl.BlockSpec((tn, 1), lambda i: (i, 0)),       # t tile
            const((1, HALF)),                              # freqs
            const((HALF, HIDDEN)),                         # W1 (cos half)
            const((HALF, HIDDEN)),                         # W1 (sin half)
            const((1, HIDDEN)),                            # b1
            const((HIDDEN, HIDDEN_PAD)),                   # W2 (lane-padded)
            const((1, HIDDEN_PAD)),                        # b2 (lane-padded)
        ],
        out_specs=pl.BlockSpec((tn, HIDDEN_PAD), lambda i: (i, 0)),
        compiler_params=pltpu.CompilerParams(
            dimension_semantics=("parallel",),             # megacore split
            vmem_limit_bytes=32 * 1024 * 1024),            # safe on v5e/v6e/v7x
    )(t2d, freqs, w1_cos, w1_sin, b1_2d, w2_pad, b2_pad)

    return out[:n, :HIDDEN]


def _ref_forward(t, w1, b1, w2, b2):
    """Pure-JAX f32 reference matching the PyTorch module."""
    freqs = jnp.exp(-math.log(MAX_PERIOD) * jnp.arange(HALF, dtype=jnp.float32) / HALF)
    args = t.astype(jnp.float32)[:, None] * freqs[None]
    emb = jnp.concatenate([jnp.cos(args), jnp.sin(args)], axis=-1)
    h = emb @ w1 + b1
    h = h * jax.nn.sigmoid(h)
    return h @ w2 + b2


if __name__ == "__main__":
    key = jax.random.PRNGKey(0)
    k_t, k_w1, k_b1, k_w2, k_b2, k_t2, k_t3 = jax.random.split(key, 7)

    # Deterministic synthetic parameters (nn.Linear weights stored as (in, out)).
    w1 = jax.random.normal(k_w1, (FREQ_DIM, HIDDEN), jnp.float32) * 0.02
    b1 = jax.random.normal(k_b1, (HIDDEN,), jnp.float32) * 0.02
    w2 = jax.random.normal(k_w2, (HIDDEN, HIDDEN), jnp.float32) * 0.02
    b2 = jax.random.normal(k_b2, (HIDDEN,), jnp.float32) * 0.02

    # Small batch (single grid step, tn collapses to 8).
    N = 8
    t = jax.random.uniform(k_t, (N,), jnp.float32, minval=0.0, maxval=1000.0)
    out = jax.block_until_ready(timestep_embedder(t, w1, b1, w2, b2))
    ref = _ref_forward(t, w1, b1, w2, b2)
    assert out.shape == (N, HIDDEN)
    assert jnp.allclose(out, ref, atol=5e-3, rtol=2e-2), "mismatch vs. JAX reference (N=8)"

    # Batch grid + padding path (N not a multiple of the tile).
    N2 = 300
    t2 = jax.random.uniform(k_t2, (N2,), jnp.float32, minval=0.0, maxval=1000.0)
    out2 = jax.block_until_ready(timestep_embedder(t2, w1, b1, w2, b2, tile_n=128))
    ref2 = _ref_forward(t2, w1, b1, w2, b2)
    assert out2.shape == (N2, HIDDEN)
    assert jnp.allclose(out2, ref2, atol=5e-3, rtol=2e-2), "mismatch vs. JAX reference (N=300)"

    # Large batch exercising the default 2048-row tile (multi-step grid).
    N3 = 5000
    t3 = jax.random.uniform(k_t3, (N3,), jnp.float32, minval=0.0, maxval=1000.0)
    out3 = jax.block_until_ready(timestep_embedder(t3, w1, b1, w2, b2))
    ref3 = _ref_forward(t3, w1, b1, w2, b2)
    assert out3.shape == (N3, HIDDEN)
    assert jnp.allclose(out3, ref3, atol=5e-3, rtol=2e-2), "mismatch vs. JAX reference (N=5000)"

    print("KERNEL_OK")
</pallas_src>

<mosaic_0001>
module attributes {stable_mosaic.version = 11 : i64} {
  func.func @timestep_embedder_kernel(%arg0: i32, %arg1: memref<8x1xf32, #tpu.memory_space<vmem>>, %arg2: memref<1x128xf32, #tpu.memory_space<vmem>>, %arg3: memref<128x32xbf16, #tpu.memory_space<vmem>>, %arg4: memref<128x32xbf16, #tpu.memory_space<vmem>>, %arg5: memref<1x32xf32, #tpu.memory_space<vmem>>, %arg6: memref<32x128xbf16, #tpu.memory_space<vmem>>, %arg7: memref<1x128xf32, #tpu.memory_space<vmem>>, %arg8: memref<8x128xf32, #tpu.memory_space<vmem>>) attributes {dimension_semantics = [#tpu.dimension_semantics<parallel>], iteration_bounds = array<i64: 1>, scalar_prefetch = 0 : i64, scratch_operands = 0 : i64, tpu.core_type = #tpu.core_type<tc>, window_params = [{transform_indices = @transform_0, window_bounds = array<i64: 8, 1>}, {pipeline_mode = #tpu.pipeline_mode<synchronous>, transform_indices = @transform_1, window_bounds = array<i64: 1, 128>}, {pipeline_mode = #tpu.pipeline_mode<synchronous>, transform_indices = @transform_2, window_bounds = array<i64: 128, 32>}, {pipeline_mode = #tpu.pipeline_mode<synchronous>, transform_indices = @transform_3, window_bounds = array<i64: 128, 32>}, {pipeline_mode = #tpu.pipeline_mode<synchronous>, transform_indices = @transform_4, window_bounds = array<i64: 1, 32>}, {pipeline_mode = #tpu.pipeline_mode<synchronous>, transform_indices = @transform_5, window_bounds = array<i64: 32, 128>}, {pipeline_mode = #tpu.pipeline_mode<synchronous>, transform_indices = @transform_6, window_bounds = array<i64: 1, 128>}, {transform_indices = @transform_7, window_bounds = array<i64: 8, 128>}]} {
    %c0 = arith.constant 0 : index
    %c0_0 = arith.constant 0 : index
    %0 = vector.load %arg1[%c0, %c0_0] : memref<8x1xf32, #tpu.memory_space<vmem>>, vector<8x1xf32>
    %c0_1 = arith.constant 0 : index
    %c0_2 = arith.constant 0 : index
    %1 = vector.load %arg2[%c0_1, %c0_2] : memref<1x128xf32, #tpu.memory_space<vmem>>, vector<1x128xf32>
    %2 = vector.broadcast %0 : vector<8x1xf32> to vector<8x128xf32>
    %3 = vector.broadcast %1 : vector<1x128xf32> to vector<8x128xf32>
    %4 = arith.mulf %2, %3 : vector<8x128xf32>
    %cst = arith.constant 0.636619746 : f32
    %5 = vector.broadcast %cst : f32 to vector<8x128xf32>
    %6 = arith.mulf %4, %5 : vector<8x128xf32>
    %cst_3 = arith.constant 5.000000e-01 : f32
    %7 = vector.broadcast %cst_3 : f32 to vector<8x128xf32>
    %8 = arith.addf %6, %7 : vector<8x128xf32>
    %9 = math.floor %8 : vector<8x128xf32>
    %cst_4 = arith.constant 1.57067871 : f32
    %10 = vector.broadcast %cst_4 : f32 to vector<8x128xf32>
    %11 = arith.mulf %9, %10 : vector<8x128xf32>
    %12 = arith.subf %4, %11 : vector<8x128xf32>
    %cst_5 = arith.constant 1.17615855E-4 : f32
    %13 = vector.broadcast %cst_5 : f32 to vector<8x128xf32>
    %14 = arith.mulf %9, %13 : vector<8x128xf32>
    %15 = arith.subf %12, %14 : vector<8x128xf32>
    %16 = arith.mulf %15, %15 : vector<8x128xf32>
    %cst_6 = arith.constant -1.98412701E-4 : f32
    %17 = vector.broadcast %cst_6 : f32 to vector<8x128xf32>
    %18 = arith.mulf %16, %17 : vector<8x128xf32>
    %cst_7 = arith.constant 0.00833333377 : f32
    %19 = vector.broadcast %cst_7 : f32 to vector<8x128xf32>
    %20 = arith.addf %19, %18 : vector<8x128xf32>
    %21 = arith.mulf %16, %20 : vector<8x128xf32>
    %cst_8 = arith.constant -0.166666672 : f32
    %22 = vector.broadcast %cst_8 : f32 to vector<8x128xf32>
    %23 = arith.addf %22, %21 : vector<8x128xf32>
    %24 = arith.mulf %16, %23 : vector<8x128xf32>
    %cst_9 = arith.constant 1.000000e+00 : f32
    %25 = vector.broadcast %cst_9 : f32 to vector<8x128xf32>
    %26 = arith.addf %25, %24 : vector<8x128xf32>
    %27 = arith.mulf %15, %26 : vector<8x128xf32>
    %cst_10 = arith.constant -0.00138888892 : f32
    %28 = vector.broadcast %cst_10 : f32 to vector<8x128xf32>
    %29 = arith.mulf %16, %28 : vector<8x128xf32>
    %cst_11 = arith.constant 0.0416666679 : f32
    %30 = vector.broadcast %cst_11 : f32 to vector<8x128xf32>
    %31 = arith.addf %30, %29 : vector<8x128xf32>
    %32 = arith.mulf %16, %31 : vector<8x128xf32>
    %cst_12 = arith.constant -5.000000e-01 : f32
    %33 = vector.broadcast %cst_12 : f32 to vector<8x128xf32>
    %34 = arith.addf %33, %32 : vector<8x128xf32>
    %35 = arith.mulf %16, %34 : vector<8x128xf32>
    %cst_13 = arith.constant 1.000000e+00 : f32
    %36 = vector.broadcast %cst_13 : f32 to vector<8x128xf32>
    %37 = arith.addf %36, %35 : vector<8x128xf32>
    %38 = arith.fptosi %9 : vector<8x128xf32> to vector<8x128xi32>
    %c1_i32 = arith.constant 1 : i32
    %39 = vector.broadcast %c1_i32 : i32 to vector<8x128xi32>
    %40 = arith.andi %38, %39 : vector<8x128xi32>
    %c0_i32 = arith.constant 0 : i32
    %41 = vector.broadcast %c0_i32 : i32 to vector<8x128xi32>
    %42 = arith.cmpi ne, %40, %41 : vector<8x128xi32>
    %43 = arith.select %42, %37, %27 : vector<8x128xi1>, vector<8x128xf32>
    %44 = arith.select %42, %27, %37 : vector<8x128xi1>, vector<8x128xf32>
    %c2_i32 = arith.constant 2 : i32
    %45 = vector.broadcast %c2_i32 : i32 to vector<8x128xi32>
    %46 = arith.andi %38, %45 : vector<8x128xi32>
    %c0_i32_14 = arith.constant 0 : i32
    %47 = vector.broadcast %c0_i32_14 : i32 to vector<8x128xi32>
    %48 = arith.cmpi ne, %46, %47 : vector<8x128xi32>
    %cst_15 = arith.constant 0.000000e+00 : f32
    %49 = vector.broadcast %cst_15 : f32 to vector<8x128xf32>
    %50 = arith.subf %49, %43 : vector<8x128xf32>
    %51 = arith.select %48, %50, %43 : vector<8x128xi1>, vector<8x128xf32>
    %c1_i32_16 = arith.constant 1 : i32
    %52 = vector.broadcast %c1_i32_16 : i32 to vector<8x128xi32>
    %53 = arith.addi %38, %52 : vector<8x128xi32>
    %c2_i32_17 = arith.constant 2 : i32
    %54 = vector.broadcast %c2_i32_17 : i32 to vector<8x128xi32>
    %55 = arith.andi %53, %54 : vector<8x128xi32>
    %c0_i32_18 = arith.constant 0 : i32
    %56 = vector.broadcast %c0_i32_18 : i32 to vector<8x128xi32>
    %57 = arith.cmpi ne, %55, %56 : vector<8x128xi32>
    %cst_19 = arith.constant 0.000000e+00 : f32
    %58 = vector.broadcast %cst_19 : f32 to vector<8x128xf32>
    %59 = arith.subf %58, %44 : vector<8x128xf32>
    %60 = arith.select %57, %59, %44 : vector<8x128xi1>, vector<8x128xf32>
    %61 = arith.truncf %60 : vector<8x128xf32> to vector<8x128xbf16>
    %62 = arith.truncf %51 : vector<8x128xf32> to vector<8x128xbf16>
    %c0_20 = arith.constant 0 : index
    %c0_21 = arith.constant 0 : index
    %63 = vector.load %arg3[%c0_20, %c0_21] : memref<128x32xbf16, #tpu.memory_space<vmem>>, vector<128x32xbf16>
    %cst_22 = arith.constant dense<0.000000e+00> : vector<8x32xf32>
    %64 = tpu.matmul %61, %63, %cst_22 {dimension_numbers = #tpu.dot_dimension_numbers<[1], [0], [0], [1], [0, 0, 1, 1], [], []>} : vector<8x128xbf16>, vector<128x32xbf16>, vector<8x32xf32> -> vector<8x32xf32>
    %c0_23 = arith.constant 0 : index
    %c0_24 = arith.constant 0 : index
    %65 = vector.load %arg4[%c0_23, %c0_24] : memref<128x32xbf16, #tpu.memory_space<vmem>>, vector<128x32xbf16>
    %cst_25 = arith.constant dense<0.000000e+00> : vector<8x32xf32>
    %66 = tpu.matmul %62, %65, %cst_25 {dimension_numbers = #tpu.dot_dimension_numbers<[1], [0], [0], [1], [0, 0, 1, 1], [], []>} : vector<8x128xbf16>, vector<128x32xbf16>, vector<8x32xf32> -> vector<8x32xf32>
    %67 = arith.addf %64, %66 : vector<8x32xf32>
    %c0_26 = arith.constant 0 : index
    %c0_27 = arith.constant 0 : index
    %68 = vector.load %arg5[%c0_26, %c0_27] : memref<1x32xf32, #tpu.memory_space<vmem>>, vector<1x32xf32>
    %69 = vector.broadcast %68 : vector<1x32xf32> to vector<8x32xf32>
    %70 = arith.addf %67, %69 : vector<8x32xf32>
    %71 = arith.negf %70 : vector<8x32xf32>
    %72 = math.exp %71 : vector<8x32xf32>
    %cst_28 = arith.constant 1.000000e+00 : f32
    %73 = vector.broadcast %cst_28 : f32 to vector<8x32xf32>
    %74 = arith.addf %73, %72 : vector<8x32xf32>
    %75 = arith.divf %73, %74 : vector<8x32xf32>
    %76 = arith.mulf %70, %75 : vector<8x32xf32>
    %77 = arith.truncf %76 : vector<8x32xf32> to vector<8x32xbf16>
    %c0_29 = arith.constant 0 : index
    %c0_30 = arith.constant 0 : index
    %78 = vector.load %arg6[%c0_29, %c0_30] : memref<32x128xbf16, #tpu.memory_space<vmem>>, vector<32x128xbf16>
    %cst_31 = arith.constant dense<0.000000e+00> : vector<8x128xf32>
    %79 = tpu.matmul %77, %78, %cst_31 {dimension_numbers = #tpu.dot_dimension_numbers<[1], [0], [0], [1], [0, 0, 1, 1], [], []>} : vector<8x32xbf16>, vector<32x128xbf16>, vector<8x128xf32> -> vector<8x128xf32>
    %c0_32 = arith.constant 0 : index
    %c0_33 = arith.constant 0 : index
    %80 = vector.load %arg7[%c0_32, %c0_33] : memref<1x128xf32, #tpu.memory_space<vmem>>, vector<1x128xf32>
    %81 = vector.broadcast %80 : vector<1x128xf32> to vector<8x128xf32>
    %82 = arith.addf %79, %81 : vector<8x128xf32>
    %c0_34 = arith.constant 0 : index
    %c0_35 = arith.constant 0 : index
    %83 = vector.load %arg8[%c0_34, %c0_35] : memref<8x128xf32, #tpu.memory_space<vmem>>, vector<8x128xf32>
    tpu.vector_store %arg8[%c0_34, %c0_35], %82 {strides = array<i32>} : memref<8x128xf32, #tpu.memory_space<vmem>>, vector<8x128xf32>,
    return
  }
  func.func @transform_0(%arg0: i32) -> (i32, i32) {
    %c0_i32 = arith.constant 0 : i32
    %c0_i32_0 = arith.constant 0 : i32
    return %arg0, %c0_i32 : i32, i32
  }
  func.func @transform_1(%arg0: i32) -> (i32, i32) {
    %c0_i32 = arith.constant 0 : i32
    %c0_i32_0 = arith.constant 0 : i32
    %c0_i32_1 = arith.constant 0 : i32
    return %c0_i32, %c0_i32_0 : i32, i32
  }
  func.func @transform_2(%arg0: i32) -> (i32, i32) {
    %c0_i32 = arith.constant 0 : i32
    %c0_i32_0 = arith.constant 0 : i32
    %c0_i32_1 = arith.constant 0 : i32
    return %c0_i32, %c0_i32_0 : i32, i32
  }
  func.func @transform_3(%arg0: i32) -> (i32, i32) {
    %c0_i32 = arith.constant 0 : i32
    %c0_i32_0 = arith.constant 0 : i32
    %c0_i32_1 = arith.constant 0 : i32
    return %c0_i32, %c0_i32_0 : i32, i32
  }
  func.func @transform_4(%arg0: i32) -> (i32, i32) {
    %c0_i32 = arith.constant 0 : i32
    %c0_i32_0 = arith.constant 0 : i32
    %c0_i32_1 = arith.constant 0 : i32
    return %c0_i32, %c0_i32_0 : i32, i32
  }
  func.func @transform_5(%arg0: i32) -> (i32, i32) {
    %c0_i32 = arith.constant 0 : i32
    %c0_i32_0 = arith.constant 0 : i32
    %c0_i32_1 = arith.constant 0 : i32
    return %c0_i32, %c0_i32_0 : i32, i32
  }
  func.func @transform_6(%arg0: i32) -> (i32, i32) {
    %c0_i32 = arith.constant 0 : i32
    %c0_i32_0 = arith.constant 0 : i32
    %c0_i32_1 = arith.constant 0 : i32
    return %c0_i32, %c0_i32_0 : i32, i32
  }
  func.func @transform_7(%arg0: i32) -> (i32, i32) {
    %c0_i32 = arith.constant 0 : i32
    %c0_i32_0 = arith.constant 0 : i32
    return %arg0, %c0_i32 : i32, i32
  }
}

</mosaic_0001>

<bundles_post_ra>
// kernel: tpu_custom_call.1
= control target key start
LH: loop header
LB: loop body
LE: loop exit
PB: predicated region body
PF: predicated region fallthrough
CT: control target
= control target key end

     0   :  { %v528_v1 = vmov 0   ;;  %v529_v3 = vmov 0.0   ;;  %s665_s0 = inlined_call_operand.vmem [shape: f32[8,1], index: 0, kind: input, shape index: {}]   ;;  %s666_s1 = inlined_call_operand.vmem [shape: f32[1,128], index: 1, kind: input, shape index: {}]   ;;  %s667_s2 = inlined_call_operand.vmem [shape: bf16[128,32], index: 2, kind: input, shape index: {}]   ;;  %s668_s3 = inlined_call_operand.vmem [shape: bf16[128,32], index: 3, kind: input, shape index: {}]   ;;  %s669_s4 = inlined_call_operand.vmem [shape: f32[1,32], index: 4, kind: input, shape index: {}]   ;;  %s670_s5 = inlined_call_operand.vmem [shape: bf16[32,128], index: 5, kind: input, shape index: {}]   ;;  %s671_s6 = inlined_call_operand.vmem [shape: f32[1,128], index: 6, kind: input, shape index: {}]   ;;  %s672_s7 = inlined_call_operand.hbm [shape: f32[8,128], index: 7, kind: output, shape index: {}]  }
   0x1   :  { %v28_v0 = vld [vmem:[%s665_s0] sm:$0xff]  ;;  %483 = vset.pattern.permute.xlu0 %v528_v1  ;;  %v484_v2 = vld [vmem:[%s668_s3 + $0x38] sm:$0xff]   ;;  %429 = vmatprep.subr.bf16.mxu0 %v529_v3  ;;  %v486_v5 = vld [vmem:[%s668_s3 + $0x30] sm:$0xff]  }
   0x2   :  { %32 = vperm.xlu0 %483, %v28_v0   ;;  %v485_v4 = vld [vmem:[%s667_s2 + $0x38] sm:$0xff]   ;;  %449 = vmatprep.subr.bf16.mxu1 %v529_v3  ;;  %v487_v6 = vld [vmem:[%s667_s2 + $0x30] sm:$0xff]   ;;  %v488_v7 = vld [vmem:[%s668_s3 + $0x28] sm:$0xff]  }
   0x3   :  { %430 = vmatpush3.bf16.msra.mxu0 %v484_v2  ;;  %450 = vmatpush3.bf16.msra.mxu1 %v485_v4  ;;  %v489_v8 = vld [vmem:[%s667_s2 + $0x28] sm:$0xff]   ;;  %v490_v9 = vld [vmem:[%s668_s3 + $0x20] sm:$0xff]  }
   0x4   :  { %431 = vmatprep.subr.bf16.mxu0 %v529_v3  ;;  %451 = vmatprep.subr.bf16.mxu1 %v529_v3  ;;  %v491_v10 = vld [vmem:[%s667_s2 + $0x20] sm:$0xff]  }
   0x7   :  { %432 = vmatpush3.bf16.msra.mxu0 %v486_v5  ;;  %452 = vmatpush3.bf16.msra.mxu1 %v487_v6 }
   0x8   :  { %433 = vmatprep.subr.bf16.mxu0 %v529_v3  ;;  %453 = vmatprep.subr.bf16.mxu1 %v529_v3 }
   0xb   :  { %434 = vmatpush3.bf16.msra.mxu0 %v488_v7  ;;  %454 = vmatpush3.bf16.msra.mxu1 %v489_v8 }
   0xc   :  { %435 = vmatprep.subr.bf16.mxu0 %v529_v3  ;;  %455 = vmatprep.subr.bf16.mxu1 %v529_v3 }
   0xf   :  { %436 = vmatpush3.bf16.msra.mxu0 %v490_v9 }
  0x10   :  { %12 = vsyncpa [#allocation3], 0  ;;  %456 = vmatpush3.bf16.msra.mxu1 %v491_v10  ;;  %437 = vmatprep.subr.bf16.mxu0 %v529_v3  ;;  %v492_v11 = vld [vmem:[%s668_s3 + $0x18] sm:$0xff]   ;;  %v494_v13 = vld [vmem:[%s668_s3 + $0x10] sm:$0xff]   ;;  %vm530_vm0 = vmmov 0   ;;  %vm326_vm4 = vcmask 261120  }
  0x11   :  { %457 = vmatprep.subr.bf16.mxu1 %v529_v3  ;;  %v493_v12 = vld [vmem:[%s667_s2 + $0x18] sm:$0xff]   ;;  %v495_v14 = vld [vmem:[%s667_s2 + $0x10] sm:$0xff]   ;;  %v496_v15 = vld [vmem:[%s668_s3 + $0x8] sm:$0xff]   ;;  %445 = vmatprep.mubr.msk.bf16.mxu0 %vm530_vm0, %v529_v3  ;;  %s531_s15 = smov [#allocation2]  }
  0x12   :  { %v497_v16 = vld [vmem:[%s667_s2 + $0x8] sm:$0xff]   ;;  %v498_v17 = vld [vmem:[%s668_s3] sm:$0xff]   ;;  %465 = vmatprep.mubr.msk.bf16.mxu1 %vm530_vm0, %v529_v3  ;;  %s377_s16 = sshll.u32 %s531_s15, 4  ;;  %s378_s16 = int_to_ptr.vmem [resolvable:$true] %s377_s16 }
  0x13   :  { %438 = vmatpush3.bf16.msra.mxu0 %v492_v11  ;;  %v499_v18 = vld [vmem:[%s667_s2] sm:$0xff]   ;;  %v500_v57 = vld [vmem:[%s670_s5 + $0x8] sm:$0xff]   ;;  %s506_s17 = scalar_lea.vmem %s378_s16, 128  ;;  %p511_p1 = scmp.lt.s32.totalorder %s378_s16, %s378_s16 }
  0x14   :  { %458 = vmatpush3.bf16.msra.mxu1 %v493_v12  ;;  %439 = vmatprep.subr.bf16.mxu0 %v529_v3  ;;  %v385_v19 = vld [vmem:[%s666_s1] ss:$0 sm:$0xff]  ;;  %p507_p0 = scmp.ne.s32.totalorder %s378_s16, %s506_s17  ;;  %p512_p2 = scmp.lt.s32.totalorder %s506_s17, %s506_s17 }
  0x15   :  { %459 = vmatprep.subr.bf16.mxu1 %v529_v3  ;;  %v501_v58 = vld [vmem:[%s670_s5] sm:$0xff]  }
  0x16   :  { %v402_v61 = vld [vmem:[%s669_s4] ss:$0 sm:$0xff]  ;;  %p513_p3 = por %p512_p2, %p511_p1 }
  0x17   :  { %440 = vmatpush3.bf16.msra.mxu0 %v494_v13  ;;  %v404_v12 = vld [vmem:[%s671_s6] ss:$0 sm:$0xff] }
  0x18   :  { %460 = vmatpush3.bf16.msra.mxu1 %v495_v14  ;;  %441 = vmatprep.subr.bf16.mxu0 %v529_v3  ;;  %p514_p4 = pnand %p513_p3, %p507_p0 }
  0x19   :  { %461 = vmatprep.subr.bf16.mxu1 %v529_v3 }
  0x1b   :  { %442 = vmatpush3.bf16.msra.mxu0 %v496_v15 }
  0x1c   :  { %462 = vmatpush3.bf16.msra.mxu1 %v497_v16  ;;  %443 = vmatprep.subr.bf16.mxu0 %v529_v3 }
  0x1d   :  { %463 = vmatprep.subr.bf16.mxu1 %v529_v3 }
  0x1f   :  { %444 = vmatpush3.bf16.msra.mxu0 %v498_v17 }
  0x20   :  { %464 = vmatpush3.bf16.msra.mxu1 %v499_v18  ;;  %469 = vmatprep.subr.bf16.mxu0 %v529_v3 }
  0x7d   :  { %v33_v20 = vpop.permute.xlu0 %32 }
  0x7e   :  { %v41_v21 = vmul.f32 %v385_v19, %v33_v20 }
  0x80   :  { %v42_v22 = vmul.f32 0.63661975, %v41_v21 }
  0x82   :  { %v43_v23 = vadd.f32 0.5, %v42_v22 }
  0x84   :  { %v44_v24 = vfloor.f32 %v43_v23 }
  0x86   :  { %v45_v25 = vmul.f32 1.5706787, %v44_v24  ;;  %v47_v27 = vmul.f32 0.000117615855, %v44_v24  ;;  %v477_v31 = vtrunc.f32 %v44_v24 }
  0x88   :  { %v46_v26 = vsub.f32 %v41_v21, %v45_v25  ;;  %v478_v36 = vcvt.f32.s32 %v477_v31 }
  0x8a   :  { %v48_v28 = vsub.f32 %v46_v26, %v47_v27  ;;  %v72_v42 = vadd.s32 1, %v478_v36  ;;  %v64_v43 = vand.u32 1, %v478_v36  ;;  %v68_v47 = vand.u32 2, %v478_v36 }
  0x8c   :  { %v49_v29 = vmul.f32 %v48_v28, %v48_v28  ;;  %v73_v48 = vand.u32 2, %v72_v42  ;;  %vm65_vm1 = vcmp.ne.s32.totalorder %v64_v43, 0  ;;  %vm69_vm2 = vcmp.ne.s32.totalorder %v68_v47, 0 }
  0x8e   :  { %v50_v30 = vmul.f32 -0.0001984127, %v49_v29  ;;  %v57_v32 = vmul.f32 -0.0013888889, %v49_v29  ;;  %vm74_vm3 = vcmp.ne.s32.totalorder %v73_v48, 0 }
  0x90   :  { %v51_v33 = vadd.f32 0.008333334, %v50_v30  ;;  %v58_v34 = vadd.f32 0.041666668, %v57_v32 }
  0x92   :  { %v52_v35 = vmul.f32 %v51_v33, %v49_v29  ;;  %v59_v37 = vmul.f32 %v58_v34, %v49_v29 }
  0x94   :  { %v53_v38 = vadd.f32 -0.16666667, %v52_v35  ;;  %v60_v39 = vadd.f32 -0.5, %v59_v37 }
  0x96   :  { %v54_v40 = vmul.f32 %v53_v38, %v49_v29  ;;  %v61_v41 = vmul.f32 %v60_v39, %v49_v29 }
  0x98   :  { %v55_v44 = vadd.f32 1.0, %v54_v40  ;;  %v62_v46 = vadd.f32 1.0, %v61_v41 }
  0x9a   :  { %v56_v45 = vmul.f32 %v55_v44, %v48_v28 }
  0x9c   :  { %v66_v49 = vsel %vm65_vm1, %v62_v46, %v56_v45  ;;  %v67_v50 = vsel %vm65_vm1, %v56_v45, %v62_v46 }
  0x9d   :  { %v70_v51 = vsub.f32 0.0, %v66_v49  ;;  %v75_v52 = vsub.f32 0.0, %v67_v50 }
  0x9f   :  { %v71_v53 = vsel %vm69_vm2, %v70_v51, %v66_v49  ;;  %v76_v54 = vsel %vm74_vm3, %v75_v52, %v67_v50 }
  0xa0   :  { %v78_v55 = vpack.c.bf16 %v71_v53, %v71_v53  ;;  %v77_v56 = vpack.c.bf16 %v76_v54, %v76_v54 }
  0xa2   :  { %446 = vmatmul.mubr.bf16.vlgmr.msra.gmra.mxu0 %v78_v55  ;;  %466 = vmatmul.mubr.bf16.vlgmr.msra.gmra.mxu1 %v77_v56 }
  0xa3   :  { %473 = vmatprep.mubr.msk.bf16.mxu0 %vm530_vm0, %v529_v3  ;;  %470 = vmatpush3.bf16.msra.mxu0 %v500_v57 }
  0xa4   :  { %471 = vmatprep.subr.bf16.mxu0 %v529_v3 }
  0xa7   :  { %472 = vmatpush3.bf16.msra.mxu0 %v501_v58 }
 0x162   :  { %v193_v59 = vpop.f32.mrf.mxu0  ;;  %v281_v60 = vpop.f32.mrf.mxu1 }
 0x163   :  { %v282_v62 = vadd.f32 %v281_v60, %v193_v59 }
 0x164   :  { %v447_v63 = vpop.f32.mrf.mxu0  ;;  %v467_v0 = vpop.f32.mrf.mxu1 }
 0x165   :  { %v294_v1 = vadd.f32 %v402_v61, %v282_v62 }
 0x166   :  { %v196_v2 = vpop.f32.mrf.mxu0  ;;  %v284_v4 = vpop.f32.mrf.mxu1 }
 0x167   :  { %v403_v5 = vmul.f32 -1.442695, %v294_v1 }
 0x168   :  { %v448_v6 = vpop.f32.mrf.mxu0  ;;  %v468_v3 = vpop.f32.mrf.mxu1 }
 0x169   :  { %502 = vpow2.f32 %v403_v5 }
 0x176   :  { %v503_v7 = vpop.eup %502 }
 0x177   :  { %v298_v8 = vadd.f32 1.0, %v503_v7 }
 0x179   :  { %504 = vrcp.f32 %v298_v8 }
 0x186   :  { %v505_v9 = vpop.eup %504 }
 0x187   :  { %v301_v10 = vmul.f32 %v505_v9, %v294_v1 }
 0x189   :  { %v302_v11 = vpack.c.bf16 %v301_v10, %v301_v10 }
 0x18b   :  { %474 = vmatmul.mubr.msk.bf16.vlgmr.msra.gmra.mxu0 %vm326_vm4, %v302_v11 }
 0x24b   :  { %v364_v13 = vpop.f32.mrf.mxu0 }
 0x24c   :  { %v365_v14 = vadd.f32 %v404_v12, %v364_v13 }
 0x24d   :  { %v475_v15 = vpop.f32.mrf.mxu0 }
 0x24e   :  { %370 = vst [vmem:[#allocation2] sm:$0xff] %v365_v14 }
 0x24f   :  { %v367_v16 = vpop.f32.mrf.mxu0 }
 0x250   :  { %517 = shalt.err (!%p514_p4)
}
 0x251   :  { %380 = dma.vmem_to_hbm [thread:$0]  %s378_s16, 128, %s672_s7, [#allocation3]   ;;  %v476_v17 = vpop.f32.mrf.mxu0 }
 0x252   :  { %526 = dma.done.wait [#allocation3], 128  }
 0x253   :  { %527 = vsyncadd [#allocation3], 4294967168 }
 0x254   :  { %384 = vsyncpa [#allocation3], 1 }

</bundles_post_ra>
